<compile_context>
chip_gen: v7x
topology: tpu7x:2x2x1
jax: 0.10.0
libtpu: 0.0.40
codegen_flags: <defaults>
</compile_context>

<pallas_src>
import jax
import jax.numpy as jnp
from jax.experimental import pallas as pl
from jax.experimental.pallas import tpu as pltpu

_LANES = 128
_ROW_TILE = 512  # 512x128 f32 = 256 KiB/buffer; ~85% of HBM roofline when tiled


def _x_minus_sigmoid_kernel(x_ref, o_ref):
    # v2 = sigmoid(x); v3 = x - v2.  f32 internal math, cast back on store.
    xf = x_ref[...].astype(jnp.float32)
    o_ref[...] = (xf - jax.nn.sigmoid(xf)).astype(o_ref.dtype)


def _single_block_call(x):
    # Small / irregular inputs: one full-array block in the original 4-D shape.
    # No pad, no flatten, no trailing slice; masked partial stores over the
    # sub-128-lane last dim are negligible at this size.
    ndim = x.ndim
    return pl.pallas_call(
        _x_minus_sigmoid_kernel,
        out_shape=jax.ShapeDtypeStruct(x.shape, x.dtype),
        in_specs=[pl.BlockSpec(x.shape, lambda: (0,) * ndim)],
        out_specs=pl.BlockSpec(x.shape, lambda: (0,) * ndim),
    )(x)


def _tiled_call(x):
    # Large inputs whose element count is a multiple of 128: contiguous (free)
    # reshape to a lane-dense (rows, 128) slab, 1-D grid over rows with
    # double-buffered 512-row tiles; "parallel" lets v7x shard the stream
    # across its two TensorCores.
    rows = x.size // _LANES
    x2d = x.reshape(rows, _LANES)
    out2d = pl.pallas_call(
        _x_minus_sigmoid_kernel,
        out_shape=jax.ShapeDtypeStruct((rows, _LANES), x.dtype),
        grid=(pl.cdiv(rows, _ROW_TILE),),
        in_specs=[pl.BlockSpec((_ROW_TILE, _LANES), lambda i: (i, 0))],
        out_specs=pl.BlockSpec((_ROW_TILE, _LANES), lambda i: (i, 0)),
        compiler_params=pltpu.CompilerParams(
            dimension_semantics=("parallel",)),
    )(x2d)
    return out2d.reshape(x.shape)


@jax.jit
def model_forward(x, conv_w, conv_b):
    """Reproduces Model.forward: returns v3 = x - sigmoid(x).

    v1 = conv(x) in the PyTorch module has no users; it is elided (conv_w /
    conv_b are accepted only for interface fidelity with the module).
    """
    del conv_w, conv_b  # dead in the original forward; DCE'd on purpose
    total = x.size
    if total % _LANES == 0 and (total // _LANES) >= _ROW_TILE:
        return _tiled_call(x)
    # TODO(synk): very large inputs whose size is not a multiple of 128 fall
    # back to the single-block path; pad-to-128 there if that ever matters.
    return _single_block_call(x)


if __name__ == "__main__":
    key = jax.random.PRNGKey(0)
    kx, kw, kb = jax.random.split(key, 3)

    # Input consistent with the module: (1, 3, 10, 10)
    x1 = jax.random.normal(kx, (1, 3, 10, 10), dtype=jnp.float32)

    # Conv2d(3, 32, kernel_size=1, padding=1) parameters (dead in the forward's
    # output; kept so the wrapper signature matches the module's parameters).
    fan_in = 3 * 1 * 1
    bound = 1.0 / (fan_in ** 0.5)
    conv_w = jax.random.uniform(kw, (32, 3, 1, 1), jnp.float32, -bound, bound)
    conv_b = jax.random.uniform(kb, (32,), jnp.float32, -bound, bound)

    out = model_forward(x1, conv_w, conv_b)
    jax.block_until_ready(out)

    # Sanity check against the pure-JAX reference of the forward pass.
    ref = x1 - jax.nn.sigmoid(x1)
    assert out.shape == (1, 3, 10, 10)
    assert jnp.allclose(out, ref, atol=1e-6), "mismatch vs reference"
    print("KERNEL_OK")
</pallas_src>

<mosaic_0001>
module attributes {stable_mosaic.version = 11 : i64} {
  func.func @_x_minus_sigmoid_kernel(%arg0: memref<1x3x10x10xf32, #tpu.memory_space<vmem>>, %arg1: memref<1x3x10x10xf32, #tpu.memory_space<vmem>>) attributes {dimension_semantics = [], scalar_prefetch = 0 : i64, scratch_operands = 0 : i64, tpu.core_type = #tpu.core_type<tc>} {
    %c0 = arith.constant 0 : index
    %c0_0 = arith.constant 0 : index
    %c0_1 = arith.constant 0 : index
    %c0_2 = arith.constant 0 : index
    %0 = vector.load %arg0[%c0, %c0_0, %c0_1, %c0_2] : memref<1x3x10x10xf32, #tpu.memory_space<vmem>>, vector<1x3x10x10xf32>
    %1 = arith.negf %0 : vector<1x3x10x10xf32>
    %2 = math.exp %1 : vector<1x3x10x10xf32>
    %cst = arith.constant 1.000000e+00 : f32
    %3 = vector.broadcast %cst : f32 to vector<1x3x10x10xf32>
    %4 = arith.addf %3, %2 : vector<1x3x10x10xf32>
    %5 = arith.divf %3, %4 : vector<1x3x10x10xf32>
    %6 = arith.subf %0, %5 : vector<1x3x10x10xf32>
    %c0_3 = arith.constant 0 : index
    %c0_4 = arith.constant 0 : index
    %c0_5 = arith.constant 0 : index
    %c0_6 = arith.constant 0 : index
    %7 = vector.load %arg1[%c0_3, %c0_4, %c0_5, %c0_6] : memref<1x3x10x10xf32, #tpu.memory_space<vmem>>, vector<1x3x10x10xf32>
    tpu.vector_store %arg1[%c0_3, %c0_4, %c0_5, %c0_6], %6 {strides = array<i32>} : memref<1x3x10x10xf32, #tpu.memory_space<vmem>>, vector<1x3x10x10xf32>,
    return
  }
}

</mosaic_0001>

<bundles_post_ra>
// kernel: model_forward.1
= control target key start
LH: loop header
LB: loop body
LE: loop exit
PB: predicated region body
PF: predicated region fallthrough
CT: control target
= control target key end

     0   :  { %vm56_vm0 = vcmask 80896   ;;  %vm58_vm1 = vcmask 74752   ;;  %s147_s0 = inlined_call_operand.vmem [shape: f32[1,3,10,10], index: 0, kind: input, shape index: {}]   ;;  %s148_s1 = inlined_call_operand.vmem [shape: f32[1,3,10,10], index: 1, kind: output, shape index: {}]  }
   0x1   :  { %v8_v0 = vld [vmem:[%s147_s0] sm:$0xff]  ;;  %v9_v1 = vld [vmem:[%s147_s0 + $0x8] sm:$0x3]  ;;  %v10_v2 = vld [vmem:[%s147_s0 + $0x10] sm:$0xff] }
   0x2   :  { %v68_v3 = vmul.f32 -1.442695, %v8_v0  ;;  %v69_v4 = vmul.f32 -1.442695, %v9_v1  ;;  %v70_v5 = vmul.f32 -1.442695, %v10_v2 }
   0x3   :  { %v11_v6 = vld [vmem:[%s147_s0 + $0x18] sm:$0x3]  ;;  %v12_v7 = vld [vmem:[%s147_s0 + $0x20] sm:$0xff]  ;;  %v13_v8 = vld [vmem:[%s147_s0 + $0x28] sm:$0x3] }
   0x4   :  { %74 = vpow2.f32 %v68_v3  ;;  %v71_v9 = vmul.f32 -1.442695, %v11_v6  ;;  %v72_v10 = vmul.f32 -1.442695, %v12_v7  ;;  %v73_v11 = vmul.f32 -1.442695, %v13_v8 }
   0x5   :  { %76 = vpow2.f32 %v69_v4 }
   0x6   :  { %78 = vpow2.f32 %v70_v5 }
   0x7   :  { %80 = vpow2.f32 %v71_v9 }
   0x8   :  { %82 = vpow2.f32 %v72_v10 }
   0x9   :  { %84 = vpow2.f32 %v73_v11 }
   0xe   :  { %v75_v12 = vpop.eup %74 }
   0xf   :  { %v77_v13 = vpop.eup %76  ;;  %v32_v14 = vadd.f32 1.0, %v75_v12 }
  0x10   :  { %v79_v15 = vpop.eup %78  ;;  %v33_v16 = vadd.f32 1.0, %v77_v13 }
  0x11   :  { %v81_v17 = vpop.eup %80  ;;  %86 = vrcp.f32 %v32_v14  ;;  %v34_v18 = vadd.f32 1.0, %v79_v15 }
  0x12   :  { %v83_v19 = vpop.eup %82  ;;  %88 = vrcp.f32 %v33_v16  ;;  %v35_v20 = vadd.f32 1.0, %v81_v17 }
  0x13   :  { %v85_v21 = vpop.eup %84  ;;  %90 = vrcp.f32 %v34_v18  ;;  %v36_v22 = vadd.f32 1.0, %v83_v19 }
  0x14   :  { %92 = vrcp.f32 %v35_v20  ;;  %v37_v23 = vadd.f32 1.0, %v85_v21 }
  0x15   :  { %94 = vrcp.f32 %v36_v22 }
  0x16   :  { %96 = vrcp.f32 %v37_v23 }
  0x1b   :  { %v87_v24 = vpop.eup %86 }
  0x1c   :  { %v89_v25 = vpop.eup %88  ;;  %v50_v26 = vsub.f32 %v8_v0, %v87_v24 }
  0x1d   :  { %v91_v27 = vpop.eup %90  ;;  %v51_v28 = vsub.f32 %v9_v1, %v89_v25 }
  0x1e   :  { %v93_v29 = vpop.eup %92  ;;  %57 = vst.msk [vmem:[%s148_s1] sm:$0xff] %vm56_vm0, %v50_v26  ;;  %v52_v30 = vsub.f32 %v10_v2, %v91_v27 }
  0x1f   :  { %v95_v31 = vpop.eup %94  ;;  %59 = vst.msk [vmem:[%s148_s1 + $0x8] sm:$0x3] %vm58_vm1, %v51_v28  ;;  %v53_v32 = vsub.f32 %v11_v6, %v93_v29 }
  0x20   :  { %v97_v33 = vpop.eup %96  ;;  %60 = vst.msk [vmem:[%s148_s1 + $0x10] sm:$0xff] %vm56_vm0, %v52_v30  ;;  %v54_v34 = vsub.f32 %v12_v7, %v95_v31 }
  0x21   :  { %61 = vst.msk [vmem:[%s148_s1 + $0x18] sm:$0x3] %vm58_vm1, %v53_v32  ;;  %v55_v35 = vsub.f32 %v13_v8, %v97_v33 }
  0x22   :  { %62 = vst.msk [vmem:[%s148_s1 + $0x20] sm:$0xff] %vm56_vm0, %v54_v34 }
  0x23   :  { %63 = vst.msk [vmem:[%s148_s1 + $0x28] sm:$0x3] %vm58_vm1, %v55_v35 }

</bundles_post_ra>
